<compile_context>
chip_gen: v6e
topology: v6e:2x2x1
jax: 0.10.0
libtpu: 0.0.40
codegen_flags: <defaults>
</compile_context>

<pallas_src>
import functools

import jax
import jax.numpy as jnp
from jax import lax
from jax.experimental import pallas as pl
from jax.experimental.pallas import tpu as pltpu

EPS = 1e-6
N_CH = 62
NEG_SLOPE = 0.01  # F.leaky_relu default
HIDDEN = 128


# --------------------------------------------------------------------------- #
# Kernel 0: adjacency normalisation + Chebyshev propagation matrix P.
#           Runs ONCE per forward (hoisted out of the per-timestep loop).
# --------------------------------------------------------------------------- #
def _adj_prep_kernel(adj_ref, p_ref):
    a_raw = adj_ref[...]                                    # (N, N)
    a_sym = jnp.maximum(0.5 * (a_raw.T + a_raw), 0.0)       # relu(0.5*(A.T + A))
    rowsum = jnp.sum(a_sym, axis=1, keepdims=True)
    adj = a_sym / (rowsum + EPS)                            # row-normalised adj
    s = jnp.sum(adj, axis=1, keepdims=True)                 # (N, 1)
    # NOTE: no EPS on m, matching the reference's divide-by-zero behaviour for a
    # degenerate all-zero adjacency.
    m = jnp.max(s)
    n = adj.shape[0]
    rows = lax.broadcasted_iota(jnp.int32, (n, n), 0)
    cols = lax.broadcasted_iota(jnp.int32, (n, n), 1)
    diag_s = jnp.where(rows == cols, s, 0.0)                # diag(s)
    p_ref[...] = (diag_s - adj.T) / m                       # P = (diag(s) - adj.T)/max(s)


# --------------------------------------------------------------------------- #
# Kernel 1: two ChebConv(K=2) layers on a lane-dense slab of TT timesteps.
#           Block = (TT*B, N_CH*F); the 248x248 operators stay resident.
# --------------------------------------------------------------------------- #
def _cheb_gcn_kernel(x_ref, we1_ref, wc1_ref, b1_ref,
                     we2_ref, wc2_ref, b2_ref, o_ref, *, batch_size):
    slab = x_ref[...]                                       # (R, DF) rows = t*B + b
    R, DF = slab.shape
    row = lax.broadcasted_iota(jnp.int32, (R, DF), 0)
    is_s0 = (row % batch_size) == 0                         # sample-0 rows only

    def cheb(h, w_eff, w_corr, bias):
        # out = h @ kron(I, W0.T - W1.T) + bias_tiled        (all samples)
        #     + [h @ kron(P.T, W1.T)] on sample-0 rows       (graph propagation)
        base = jnp.dot(h, w_eff, preferred_element_type=jnp.float32) + bias
        corr = jnp.dot(h, w_corr, preferred_element_type=jnp.float32)
        return base + jnp.where(is_s0, corr, 0.0)

    h1 = cheb(slab, we1_ref[...], wc1_ref[...], b1_ref[...])
    h1 = jnp.where(h1 >= 0, h1, NEG_SLOPE * h1)             # leaky_relu
    o_ref[...] = cheb(h1, we2_ref[...], wc2_ref[...], b2_ref[...])   # single store


# --------------------------------------------------------------------------- #
# Kernel 2: LSTM over T steps + linear1 + relu + linear4.
#           linear1 weight DMA overlapped with the recurrence; linear1 is one dot.
# --------------------------------------------------------------------------- #
def _lstm_head_kernel(x_ref, wih_ref, whh_ref, bg_ref,
                      w1_hbm_ref, b1_ref, w4_ref, b4_ref, o_ref,
                      w1_ref, gx_ref, hs_ref, h_ref, c_ref, w1_sem,
                      *, seq_len, batch_size):
    B = batch_size
    H = HIDDEN

    # (0) start the linear1 weight load (HBM -> VMEM); hidden behind the
    #     serial recurrence, waited on right before the contraction.
    w1_copy = pltpu.make_async_copy(w1_hbm_ref, w1_ref, w1_sem)
    w1_copy.start()

    # (1) input projection for every timestep in one MXU-friendly matmul:
    #     gates_x[t*B + b] = x[t, b] @ W_ih.T + (b_ih + b_hh)
    gx_ref[...] = (jnp.dot(x_ref[...], wih_ref[...],
                           preferred_element_type=jnp.float32)
                   + bg_ref[...])

    # (2) recurrence: only h @ W_hh.T + gate nonlinearities on the serial path.
    h_ref[...] = jnp.zeros_like(h_ref)
    c_ref[...] = jnp.zeros_like(c_ref)

    def lstm_step(t, carry):
        h = h_ref[...]
        c = c_ref[...]
        r0 = pl.multiple_of(t * B, B)
        gates = (gx_ref[pl.ds(r0, B), :]
                 + jnp.dot(h, whh_ref[...], preferred_element_type=jnp.float32))
        i_g = jax.nn.sigmoid(gates[:, 0 * H:1 * H])
        f_g = jax.nn.sigmoid(gates[:, 1 * H:2 * H])
        g_g = jnp.tanh(gates[:, 2 * H:3 * H])
        o_g = jax.nn.sigmoid(gates[:, 3 * H:4 * H])
        c_new = f_g * c + i_g * g_g
        h_new = o_g * jnp.tanh(c_new)
        h_ref[...] = h_new
        c_ref[...] = c_new
        c0 = pl.multiple_of(t * H, H)
        hs_ref[:, pl.ds(c0, H)] = h_new       # lane-aligned, unmasked 128-wide store
        return carry

    lax.fori_loop(0, seq_len, lstm_step, 0)

    # (3) linear1 collapsed into a single (B, T*H) @ (T*H, H) contraction.
    w1_copy.wait()
    z = jnp.maximum(jnp.dot(hs_ref[...], w1_ref[...],
                            preferred_element_type=jnp.float32) + b1_ref[...], 0.0)
    o_ref[...] = (jnp.dot(z, w4_ref[...], preferred_element_type=jnp.float32)
                  + b4_ref[...])


# --------------------------------------------------------------------------- #
# Wrapper
# --------------------------------------------------------------------------- #
def _choose_time_tile(seq_len, batch_size):
    """Pick TT | seq_len with (TT*B) sublane-aligned (mult of 8), capped at ~1024
    slab rows, preferring >= 2 grid steps (pipelining / v7x megacore). Falls back
    to the full sequence (always a legal whole-array block)."""
    cap_rows = 1024
    divisors = [d for d in range(1, seq_len + 1) if seq_len % d == 0]
    aligned = [d for d in divisors
               if (d * batch_size) % 8 == 0 and d * batch_size <= cap_rows]
    multi = [d for d in aligned if d < seq_len]
    if multi:
        return max(multi)
    if aligned:
        return max(aligned)
    return seq_len


def _round_up(n, m):
    return -(-n // m) * m


def _head_vmem_limit(seq_len, batch_size, feat_dim, out_dim):
    """Actual VMEM need of kernel 2 (+ headroom) instead of a blanket 64 MiB."""
    T, B, DF, H = seq_len, batch_size, feat_dim, HIDDEN
    r8 = lambda n: _round_up(max(n, 1), 8)
    rl = lambda n: _round_up(max(n, 1), 128)
    words = (
        r8(T * B) * rl(DF)          # x slab
        + r8(DF) * rl(4 * H)        # W_ih.T
        + r8(H) * rl(4 * H)         # W_hh.T
        + 8 * rl(4 * H)             # gate bias
        + 8 * rl(H)                 # b1
        + r8(H) * rl(out_dim)       # W4.T
        + 8 * rl(out_dim)           # b4
        + r8(B) * rl(out_dim)       # output
        + r8(T * H) * rl(H)         # resident linear1 weight (DMA landing buffer)
        + r8(T * B) * rl(4 * H)     # gx scratch
        + r8(B) * rl(T * H)         # hs history
        + 2 * r8(B) * rl(H)         # h, c state
    )
    need = 4 * words
    # TODO(synk): if the resident linear1 weight approaches v7x's 64 MiB VMEM
    # (T*H*H*4 bytes), stream it in K-chunks during the contraction instead.
    return int(min(max(need + (8 << 20), 24 << 20), 56 << 20))


def gcn_lstm_forward(params, x, edge_index_=None, edge_weight_=None, batch=None):
    """x: (B*N_CH, node_features, seq_len) float32 — same layout as the PyTorch
    module.  edge_index_/edge_weight_/batch are accepted for signature parity but
    (as in the reference forward) rebuilt internally from the learned adjacency."""
    BN, F, T = x.shape
    B = BN // N_CH
    DF = N_CH * F

    # (B*N, F, T) -> lane-dense 2-D slab: row = t*B + b, col = n*F + f
    # (matches torch's .transpose(2,3).transpose(1,2).reshape(B, T, N*F) flatten).
    x2d = jnp.transpose(x.reshape(B, N_CH, F, T), (3, 0, 1, 2)).reshape(T * B, DF)

    vmem = pl.BlockSpec(memory_space=pltpu.MemorySpace.VMEM)

    # --- kernel 0: hoisted adjacency normalisation (runs once per forward) ----
    p_mat = pl.pallas_call(
        _adj_prep_kernel,
        in_specs=[vmem],
        out_specs=vmem,
        out_shape=jax.ShapeDtypeStruct((N_CH, N_CH), jnp.float32),
    )(params["adj_"])

    # --- once-per-forward assembly of the 248x248 ChebConv operators ----------
    eye_n = jnp.eye(N_CH, dtype=jnp.float32)
    w_eff1 = jnp.kron(eye_n, params["conv1_w0_t"] - params["conv1_w1_t"])
    w_cor1 = jnp.kron(p_mat.T, params["conv1_w1_t"])
    b1_t = jnp.tile(params["conv1_b"], (1, N_CH))
    w_eff2 = jnp.kron(eye_n, params["conv2_w0_t"] - params["conv2_w1_t"])
    w_cor2 = jnp.kron(p_mat.T, params["conv2_w1_t"])
    b2_t = jnp.tile(params["conv2_b"], (1, N_CH))

    # --- kernel 1: time-tiled, lane-dense ChebConv stack -----------------------
    TT = _choose_time_tile(T, B)
    R = TT * B
    gcn = pl.pallas_call(
        functools.partial(_cheb_gcn_kernel, batch_size=B),
        grid=(T // TT,),
        in_specs=[
            pl.BlockSpec((R, DF), lambda t: (t, 0)),
            pl.BlockSpec((DF, DF), lambda t: (0, 0)),
            pl.BlockSpec((DF, DF), lambda t: (0, 0)),
            pl.BlockSpec((1, DF), lambda t: (0, 0)),
            pl.BlockSpec((DF, DF), lambda t: (0, 0)),
            pl.BlockSpec((DF, DF), lambda t: (0, 0)),
            pl.BlockSpec((1, DF), lambda t: (0, 0)),
        ],
        out_specs=pl.BlockSpec((R, DF), lambda t: (t, 0)),
        out_shape=jax.ShapeDtypeStruct((T * B, DF), jnp.float32),
        compiler_params=pltpu.CompilerParams(
            dimension_semantics=("parallel",)),
    )(x2d, w_eff1, w_cor1, b1_t, w_eff2, w_cor2, b2_t)

    # --- kernel 2: LSTM recurrence + linear head -------------------------------
    out_dim = params["linear4_b"].shape[-1]
    head = pl.pallas_call(
        functools.partial(_lstm_head_kernel, seq_len=T, batch_size=B),
        in_specs=[vmem, vmem, vmem, vmem,
                  pl.BlockSpec(memory_space=pl.ANY),   # linear1 weight stays in HBM
                  vmem, vmem, vmem],
        out_specs=vmem,
        out_shape=jax.ShapeDtypeStruct((B, out_dim), jnp.float32),
        scratch_shapes=[
            pltpu.VMEM((T * HIDDEN, HIDDEN), jnp.float32),   # linear1 weight landing buf
            pltpu.VMEM((T * B, 4 * HIDDEN), jnp.float32),    # precomputed x-gates
            pltpu.VMEM((B, T * HIDDEN), jnp.float32),        # lane-contiguous h history
            pltpu.VMEM((B, HIDDEN), jnp.float32),            # h state
            pltpu.VMEM((B, HIDDEN), jnp.float32),            # c state
            pltpu.SemaphoreType.DMA(()),                     # linear1 weight DMA sem
        ],
        compiler_params=pltpu.CompilerParams(
            vmem_limit_bytes=_head_vmem_limit(T, B, DF, out_dim)),
    )(gcn, params["lstm_wih_t"], params["lstm_whh_t"], params["lstm_bg"],
      params["linear1_w_t"], params["linear1_b"],
      params["linear4_w_t"], params["linear4_b"])
    return head


def init_params(key, node_features, seq_len, output_dim):
    F, T, H = node_features, seq_len, HIDDEN
    D = N_CH * F
    ks = jax.random.split(key, 16)

    def u(k, shape, scale=0.1):
        return jax.random.uniform(k, shape, jnp.float32, -scale, scale)

    adj = jax.random.uniform(ks[0], (N_CH, N_CH), jnp.float32)      # torch.rand-like
    adj = adj * (1.0 - jnp.eye(N_CH, dtype=jnp.float32))            # fill_diagonal_(0)

    conv1_w0 = u(ks[1], (F, F)); conv1_w1 = u(ks[2], (F, F)); conv1_b = u(ks[3], (1, F))
    conv2_w0 = u(ks[4], (F, F)); conv2_w1 = u(ks[5], (F, F)); conv2_b = u(ks[6], (1, F))

    w_ih = u(ks[7], (4 * H, D)); w_hh = u(ks[8], (4 * H, H))
    b_ih = u(ks[9], (4 * H,));   b_hh = u(ks[10], (4 * H,))

    # NOTE: the module hardcodes Linear(250*128, 128); here parametrised by
    # seq_len*128 so small test shapes stay consistent with the forward pass.
    lin1_w = u(ks[11], (H, T * H)); lin1_b = u(ks[12], (1, H))
    lin4_w = u(ks[13], (output_dim, H)); lin4_b = u(ks[14], (1, output_dim))

    return dict(
        adj_=adj,
        conv1_w0_t=conv1_w0.T, conv1_w1_t=conv1_w1.T, conv1_b=conv1_b,
        conv2_w0_t=conv2_w0.T, conv2_w1_t=conv2_w1.T, conv2_b=conv2_b,
        lstm_wih_t=w_ih.T, lstm_whh_t=w_hh.T,
        lstm_bg=(b_ih + b_hh).reshape(1, 4 * H),
        linear1_w_t=lin1_w.T,          # (T*H, H): flatten(lstm_out,1) @ this = linear1
        linear1_b=lin1_b,
        linear4_w_t=lin4_w.T,
        linear4_b=lin4_b,
    )


if __name__ == "__main__":
    key = jax.random.PRNGKey(0)
    node_features, seq_len, output_dim, batch = 4, 8, 3, 2

    pkey, xkey = jax.random.split(key)
    params = init_params(pkey, node_features, seq_len, output_dim)
    x = jax.random.normal(xkey, (batch * N_CH, node_features, seq_len), jnp.float32)

    out = gcn_lstm_forward(params, x)
    out = jax.block_until_ready(out)
    assert out.shape == (batch, output_dim)
    assert jnp.all(jnp.isfinite(out))
    print("KERNEL_OK")
</pallas_src>

<mosaic_0001>
module attributes {stable_mosaic.version = 11 : i64} {
  func.func @_adj_prep_kernel(%arg0: memref<62x62xf32, #tpu.memory_space<vmem>>, %arg1: memref<62x62xf32, #tpu.memory_space<vmem>>) attributes {dimension_semantics = [], scalar_prefetch = 0 : i64, scratch_operands = 0 : i64, tpu.core_type = #tpu.core_type<tc>} {
    %c0 = arith.constant 0 : index
    %c0_0 = arith.constant 0 : index
    %0 = vector.load %arg0[%c0, %c0_0] : memref<62x62xf32, #tpu.memory_space<vmem>>, vector<62x62xf32>
    %1 = tpu.transpose %0, [1, 0] : vector<62x62xf32> -> vector<62x62xf32>
    %2 = arith.addf %1, %0 : vector<62x62xf32>
    %cst = arith.constant 5.000000e-01 : f32
    %3 = vector.broadcast %cst : f32 to vector<62x62xf32>
    %4 = arith.mulf %3, %2 : vector<62x62xf32>
    %cst_1 = arith.constant 0.000000e+00 : f32
    %5 = vector.broadcast %cst_1 : f32 to vector<62x62xf32>
    %6 = arith.maximumf %4, %5 : vector<62x62xf32>
    %cst_2 = arith.constant dense<0.000000e+00> : vector<62xf32>
    %7 = vector.multi_reduction <add>, %6, %cst_2 [1] : vector<62x62xf32> to vector<62xf32>
    %8 = vector.shape_cast %7 : vector<62xf32> to vector<62x1xf32>
    %cst_3 = arith.constant 9.99999997E-7 : f32
    %9 = vector.broadcast %cst_3 : f32 to vector<62x1xf32>
    %10 = arith.addf %8, %9 : vector<62x1xf32>
    %11 = vector.broadcast %10 : vector<62x1xf32> to vector<62x62xf32>
    %12 = arith.divf %6, %11 : vector<62x62xf32>
    %cst_4 = arith.constant dense<0.000000e+00> : vector<62xf32>
    %13 = vector.multi_reduction <add>, %12, %cst_4 [1] : vector<62x62xf32> to vector<62xf32>
    %14 = vector.shape_cast %13 : vector<62xf32> to vector<62x1xf32>
    %15 = vector.shape_cast %14 : vector<62x1xf32> to vector<1x62x1xf32>
    %cst_5 = arith.constant dense<0xFF800000> : vector<1xf32>
    %16 = vector.multi_reduction <maximumf>, %15, %cst_5 [1, 2] : vector<1x62x1xf32> to vector<1xf32>
    %17 = vector.shape_cast %16 : vector<1xf32> to vector<1x1x1xf32>
    %18 = vector.extract %17[0, 0, 0] : f32 from vector<1x1x1xf32>
    %19 = tpu.iota {dimensions = array<i32: 0>} : vector<62x62xi32>
    %20 = tpu.iota {dimensions = array<i32: 1>} : vector<62x62xi32>
    %21 = arith.cmpi eq, %19, %20 : vector<62x62xi32>
    %cst_6 = arith.constant 0.000000e+00 : f32
    %22 = vector.shape_cast %14 : vector<62x1xf32> to vector<62x1xf32>
    %23 = vector.broadcast %22 : vector<62x1xf32> to vector<62x62xf32>
    %24 = vector.broadcast %cst_6 : f32 to vector<62x62xf32>
    %25 = arith.select %21, %23, %24 : vector<62x62xi1>, vector<62x62xf32>
    %26 = tpu.transpose %12, [1, 0] : vector<62x62xf32> -> vector<62x62xf32>
    %27 = arith.subf %25, %26 : vector<62x62xf32>
    %28 = vector.broadcast %18 : f32 to vector<62x62xf32>
    %29 = arith.divf %27, %28 : vector<62x62xf32>
    %c0_7 = arith.constant 0 : index
    %c0_8 = arith.constant 0 : index
    %30 = vector.load %arg1[%c0_7, %c0_8] : memref<62x62xf32, #tpu.memory_space<vmem>>, vector<62x62xf32>
    tpu.vector_store %arg1[%c0_7, %c0_8], %29 {strides = array<i32>} : memref<62x62xf32, #tpu.memory_space<vmem>>, vector<62x62xf32>,
    return
  }
}

</mosaic_0001>

<bundles_post_ra>
// kernel: tpu_custom_call.1
= control target key start
LH: loop header
LB: loop body
LE: loop exit
PB: predicated region body
PF: predicated region fallthrough
CT: control target
= control target key end

     0   :  { %6 = vsyncpa [#allocation3], 0  ;;  %s419_s0 = inlined_call_operand.hbm [shape: f32[62,62], index: 0, kind: input, shape index: {}]   ;;  %s420_s1 = inlined_call_operand.hbm [shape: f32[62,62], index: 1, kind: output, shape index: {}]  }
   0x1   :  { %7 = vsyncpa [#allocation4], 0  ;;  %s348_s6 = smov [#allocation2]  }
   0x2   :  { %s13_s7 = sshll.u32 %s348_s6, 4  ;;  %s14_s7 = int_to_ptr.vmem [resolvable:$true] %s13_s7 }
   0x3   :  { %s312_s8 = scalar_lea.vmem %s14_s7, 1024  ;;  %p317_p1 = scmp.lt.s32.totalorder %s14_s7, %s14_s7 }
   0x4   :  { %p313_p0 = scmp.ne.s32.totalorder %s14_s7, %s312_s8  ;;  %p318_p2 = scmp.lt.s32.totalorder %s312_s8, %s312_s8 }
   0x6   :  { %p319_p3 = por %p318_p2, %p317_p1 }
   0x8   :  { %p320_p4 = pnand %p319_p3, %p313_p0 }
   0xa   :  { %323 = shalt.err (!%p320_p4)
}
   0xb   :  { %s349_s9 = smov 128   ;;  %s350_s10 = smov 8  }
   0xc   :  { %19 = dma.hbm_to_vmem [thread:$0]  %s419_s0, 1024, %s14_s7, [#allocation3], %s349_s9, %s349_s9, %s350_s10  }
   0xd   :  { %344 = dma.done.wait [#allocation3], 1024  }
   0xe   :  { %345 = vsyncadd [#allocation3], 4294966272  ;;  %v23_v0 = vld [vmem:[#allocation2] sm:$0xff]  ;;  %v24_v1 = vld [vmem:[#allocation2 + $0x8] sm:$0xff]  ;;  %vm87_vm0 = vcmask 506880   ;;  %vm109_vm1 = vcmask 504832  }
   0xf   :  { %31 = vxpose.xlu0.b32.start [1/8] (short) (narrow) %v23_v0, 64  ;;  %v25_v2 = vld [vmem:[#allocation2 + $0x10] sm:$0xff]  ;;  %v26_v3 = vld [vmem:[#allocation2 + $0x18] sm:$0xff]  ;;  %v27_v4 = vld [vmem:[#allocation2 + $0x20] sm:$0xff]  ;;  %vm164_vm2 = vcmask 1045504   ;;  %s351_s13 = smov [#allocation5]  }
  0x10   :  { %v28_v5 = vld [vmem:[#allocation2 + $0x28] sm:$0xff]  ;;  %v29_v6 = vld [vmem:[#allocation2 + $0x30] sm:$0xff]  ;;  %v30_v7 = vld [vmem:[#allocation2 + $0x38] sm:$0x3f]  ;;  %s267_s14 = sshll.u32 %s351_s13, 4  ;;  %s268_s14 = int_to_ptr.vmem [resolvable:$true] %s267_s14 }
  0x11   :  { %s324_s15 = scalar_lea.vmem %s268_s14, 1024  ;;  %p329_p6 = scmp.lt.s32.totalorder %s268_s14, %s268_s14 }
  0x12   :  { %p325_p5 = scmp.ne.s32.totalorder %s268_s14, %s324_s15  ;;  %p330_p7 = scmp.lt.s32.totalorder %s324_s15, %s324_s15 }
  0x13   :  { %32 = vxpose.xlu0.b32.cont [2/8] (short) (narrow) %v24_v1, 64 }
  0x14   :  { %p331_p8 = por %p330_p7, %p329_p6 }
  0x16   :  { %p332_p9 = pnand %p331_p8, %p325_p5 }
  0x17   :  { %33 = vxpose.xlu0.b32.cont [3/8] (short) (narrow) %v25_v2, 64 }
  0x1b   :  { %34 = vxpose.xlu0.b32.cont [4/8] (short) (narrow) %v26_v3, 64 }
  0x1f   :  { %35 = vxpose.xlu0.b32.cont [5/8] (short) (narrow) %v27_v4, 64 }
  0x23   :  { %36 = vxpose.xlu0.b32.cont [6/8] (short) (narrow) %v28_v5, 64 }
  0x27   :  { %37 = vxpose.xlu0.b32.cont [7/8] (short) (narrow) %v29_v6, 64 }
  0x2b   :  { %38 = vxpose.xlu0.b32.end [8/8] (short) (narrow) %v30_v7, 64 }
  0x8b   :  { %v47_v8 = vpop.trf.xlu0 }
  0x8c   :  { %v63_v9 = vadd.f32 %v47_v8, %v23_v0 }
  0x8e   :  { %v368_v10 = vmul.f32 0.5, %v63_v9 }
  0x8f   :  { %v48_v11 = vpop.trf.xlu0 }
  0x90   :  { %v79_v12 = vmax.f32 %v368_v10, 0.0  ;;  %v64_v13 = vadd.f32 %v48_v11, %v24_v1 }
  0x92   :  { %v371_v14 = vmul.f32 0.5, %v64_v13  ;;  %v88_v15 = vsel %vm87_vm0, %v79_v12, 0.0 }
  0x93   :  { %89 = vadd.xlane.f32.xlu1 %v88_v15  ;;  %v49_v16 = vpop.trf.xlu0 }
  0x94   :  { %v80_v17 = vmax.f32 %v371_v14, 0.0  ;;  %v65_v18 = vadd.f32 %v49_v16, %v25_v2 }
  0x96   :  { %v375_v19 = vmul.f32 0.5, %v65_v18  ;;  %v91_v20 = vsel %vm87_vm0, %v80_v17, 0.0 }
  0x97   :  { %92 = vadd.xlane.f32.xlu1 %v91_v20  ;;  %v50_v21 = vpop.trf.xlu0 }
  0x98   :  { %v81_v22 = vmax.f32 %v375_v19, 0.0  ;;  %v66_v23 = vadd.f32 %v50_v21, %v26_v3 }
  0x9a   :  { %v379_v24 = vmul.f32 0.5, %v66_v23  ;;  %v94_v25 = vsel %vm87_vm0, %v81_v22, 0.0 }
  0x9b   :  { %95 = vadd.xlane.f32.xlu1 %v94_v25  ;;  %v51_v26 = vpop.trf.xlu0 }
  0x9c   :  { %v82_v27 = vmax.f32 %v379_v24, 0.0  ;;  %v67_v28 = vadd.f32 %v51_v26, %v27_v4 }
  0x9e   :  { %v383_v29 = vmul.f32 0.5, %v67_v28  ;;  %v97_v30 = vsel %vm87_vm0, %v82_v27, 0.0 }
  0x9f   :  { %98 = vadd.xlane.f32.xlu1 %v97_v30  ;;  %v52_v31 = vpop.trf.xlu0 }
  0xa0   :  { %v83_v32 = vmax.f32 %v383_v29, 0.0  ;;  %v68_v33 = vadd.f32 %v52_v31, %v28_v5 }
  0xa2   :  { %v387_v34 = vmul.f32 0.5, %v68_v33  ;;  %v100_v35 = vsel %vm87_vm0, %v83_v32, 0.0 }
  0xa3   :  { %101 = vadd.xlane.f32.xlu1 %v100_v35  ;;  %v53_v36 = vpop.trf.xlu0 }
  0xa4   :  { %v84_v37 = vmax.f32 %v387_v34, 0.0  ;;  %v69_v38 = vadd.f32 %v53_v36, %v29_v6 }
  0xa6   :  { %v103_v39 = vsel %vm87_vm0, %v84_v37, 0.0  ;;  %v392_v42 = vmul.f32 0.5, %v69_v38 }
  0xa7   :  { %104 = vadd.xlane.f32.xlu1 %v103_v39  ;;  %v54_v40 = vpop.trf.xlu0 }
  0xa8   :  { %v70_v41 = vadd.f32 %v54_v40, %v30_v7  ;;  %v85_v45 = vmax.f32 %v392_v42, 0.0 }
  0xaa   :  { %v78_v43 = vmul.f32 0.5, %v70_v41  ;;  %v106_v47 = vsel %vm87_vm0, %v85_v45, 0.0 }
  0xac   :  { %v86_v44 = vmax.f32 %v78_v43, 0.0 }
  0xae   :  { %v110_v46 = vsel %vm109_vm1, %v86_v44, 0.0 }
  0xaf   :  { %111 = vadd.xlane.f32.xlu1 %v110_v46 }
  0xb3   :  { %107 = vadd.xlane.f32.xlu1 %v106_v47 }
 0x11c   :  { %v90_v48 = vpop.xlane.xlu1 %89 }
 0x11d   :  { %v113_v49 = vadd.f32 1e-06, %v90_v48 }
 0x11f   :  { %286 = vrcp.f32 %v113_v49 }
 0x120   :  { %v93_v50 = vpop.xlane.xlu1 %92 }
 0x121   :  { %v114_v51 = vadd.f32 1e-06, %v93_v50 }
 0x123   :  { %288 = vrcp.f32 %v114_v51  ;;  %v177_v51 = vlaneseq }
 0x124   :  { %v96_v52 = vpop.xlane.xlu1 %95 }
 0x125   :  { %v115_v53 = vadd.f32 1e-06, %v96_v52 }
 0x127   :  { %290 = vrcp.f32 %v115_v53 }
 0x128   :  { %v99_v54 = vpop.xlane.xlu1 %98 }
 0x129   :  { %v116_v55 = vadd.f32 1e-06, %v99_v54  ;;  %v178_v54 = vshrl.u32 %v177_v51, 7 }
 0x12b   :  { %292 = vrcp.f32 %v116_v55  ;;  %v187_v55 = vand.u32 127, %v177_v51 }
 0x12c   :  { %v287_v56 = vpop.eup %286  ;;  %v102_v57 = vpop.xlane.xlu1 %101 }
 0x12d   :  { %v117_v58 = vadd.f32 1e-06, %v102_v57  ;;  %v122_v59 = vmul.f32 %v287_v56, %v79_v12  ;;  %v179_v56 = vadd.s32 8, %v178_v54  ;;  %v180_v57 = vadd.s32 16, %v178_v54 }
 0x12e   :  { %vm188_vm3 = vcmp.eq.s32.totalorder %v178_v54, %v187_v55 }
 0x12f   :  { %294 = vrcp.f32 %v117_v58  ;;  %v137_v60 = vsel %vm87_vm0, %v122_v59, 0.0  ;;  %v181_v58 = vadd.s32 24, %v178_v54  ;;  %vm189_vm4 = vcmp.eq.s32.totalorder %v179_v56, %v187_v55 }
 0x130   :  { %v289_v61 = vpop.eup %288  ;;  %v105_v62 = vpop.xlane.xlu1 %104  ;;  %138 = vadd.xlane.f32.xlu1 %v137_v60  ;;  %v182_v60 = vadd.s32 32, %v178_v54  ;;  %vm190_vm5 = vcmp.eq.s32.totalorder %v180_v57, %v187_v55 }
 0x131   :  { %v118_v63 = vadd.f32 1e-06, %v105_v62  ;;  %v124_v0 = vmul.f32 %v289_v61, %v80_v17  ;;  %v183_v61 = vadd.s32 40, %v178_v54  ;;  %v184_v62 = vadd.s32 48, %v178_v54 }
 0x132   :  { %vm191_vm6 = vcmp.eq.s32.totalorder %v181_v58, %v187_v55  ;;  %vm192_vm8 = vcmp.eq.s32.totalorder %v182_v60, %v187_v55 }
 0x133   :  { %296 = vrcp.f32 %v118_v63  ;;  %v140_v1 = vsel %vm87_vm0, %v124_v0, 0.0  ;;  %vm193_vm9 = vcmp.eq.s32.totalorder %v183_v61, %v187_v55  ;;  %vm194_vm10 = vcmp.eq.s32.totalorder %v184_v62, %v187_v55 }
 0x134   :  { %v291_v2 = vpop.eup %290  ;;  %141 = vadd.xlane.f32.xlu1 %v140_v1 }
 0x135   :  { %v126_v3 = vmul.f32 %v291_v2, %v81_v22 }
 0x137   :  { %v143_v4 = vsel %vm87_vm0, %v126_v3, 0.0 }
 0x138   :  { %v293_v5 = vpop.eup %292  ;;  %144 = vadd.xlane.f32.xlu1 %v143_v4  ;;  %v112_v6 = vpop.xlane.xlu1 %111 }
 0x139   :  { %v120_v7 = vadd.f32 1e-06, %v112_v6  ;;  %v128_v8 = vmul.f32 %v293_v5, %v82_v27 }
 0x13b   :  { %298 = vrcp.f32 %v120_v7  ;;  %v146_v9 = vsel %vm87_vm0, %v128_v8, 0.0 }
 0x13c   :  { %v295_v10 = vpop.eup %294  ;;  %147 = vadd.xlane.f32.xlu1 %v146_v9  ;;  %v108_v11 = vpop.xlane.xlu1 %107 }
 0x13d   :  { %v119_v12 = vadd.f32 1e-06, %v108_v11  ;;  %v130_v13 = vmul.f32 %v295_v10, %v83_v32 }
 0x13f   :  { %300 = vrcp.f32 %v119_v12  ;;  %v149_v14 = vsel %vm87_vm0, %v130_v13, 0.0 }
 0x140   :  { %v297_v15 = vpop.eup %296  ;;  %150 = vadd.xlane.f32.xlu1 %v149_v14 }
 0x141   :  { %v132_v16 = vmul.f32 %v297_v15, %v84_v37 }
 0x143   :  { %v152_v17 = vsel %vm87_vm0, %v132_v16, 0.0 }
 0x144   :  { %153 = vadd.xlane.f32.xlu1 %v152_v17 }
 0x148   :  { %v299_v18 = vpop.eup %298 }
 0x149   :  { %v136_v19 = vmul.f32 %v299_v18, %v86_v44 }
 0x14b   :  { %v158_v20 = vsel %vm109_vm1, %v136_v19, 0.0 }
 0x14c   :  { %v301_v21 = vpop.eup %300  ;;  %159 = vadd.xlane.f32.xlu0 %v158_v20 }
 0x14d   :  { %v134_v22 = vmul.f32 %v301_v21, %v85_v45 }
 0x14f   :  { %v155_v23 = vsel %vm87_vm0, %v134_v22, 0.0 }
 0x150   :  { %156 = vadd.xlane.f32.xlu1 %v155_v23 }
 0x183   :  { %204 = vxpose.xlu1.b32.start [1/8] (short) (narrow) %v122_v59, 64  ;;  %v185_v59 = vadd.s32 56, %v178_v54 }
 0x185   :  { %vm195_vm7 = vcmp.eq.s32.totalorder %v185_v59, %v187_v55 }
 0x187   :  { %205 = vxpose.xlu1.b32.cont [2/8] (short) (narrow) %v124_v0, 64 }
 0x18b   :  { %206 = vxpose.xlu1.b32.cont [3/8] (short) (narrow) %v126_v3, 64 }
 0x18f   :  { %207 = vxpose.xlu1.b32.cont [4/8] (short) (narrow) %v128_v8, 64 }
 0x193   :  { %208 = vxpose.xlu1.b32.cont [5/8] (short) (narrow) %v130_v13, 64 }
 0x197   :  { %209 = vxpose.xlu1.b32.cont [6/8] (short) (narrow) %v132_v16, 64 }
 0x19b   :  { %210 = vxpose.xlu1.b32.cont [7/8] (short) (narrow) %v134_v22, 64 }
 0x19f   :  { %211 = vxpose.xlu1.b32.end [8/8] (short) (narrow) %v136_v19, 64 }
 0x1b9   :  { %v139_v24 = vpop.xlane.xlu1 %138 }
 0x1ba   :  { %v196_v0 = vsel %vm188_vm3, %v139_v24, 0.0 }
 0x1bd   :  { %v142_v25 = vpop.xlane.xlu1 %141 }
 0x1be   :  { %v197_v1 = vsel %vm189_vm4, %v142_v25, 0.0 }
 0x1c1   :  { %v145_v26 = vpop.xlane.xlu1 %144 }
 0x1c2   :  { %v198_v2 = vsel %vm190_vm5, %v145_v26, 0.0 }
 0x1c5   :  { %v148_v27 = vpop.xlane.xlu1 %147 }
 0x1c6   :  { %v199_v3 = vsel %vm191_vm6, %v148_v27, 0.0 }
 0x1c9   :  { %v151_v28 = vpop.xlane.xlu1 %150 }
 0x1ca   :  { %v161_v34 = vmax.f32 %v139_v24, %v151_v28  ;;  %v200_v6 = vsel %vm192_vm8, %v151_v28, 0.0 }
 0x1cd   :  { %v154_v29 = vpop.xlane.xlu1 %153 }
 0x1ce   :  { %v162_v32 = vmax.f32 %v142_v25, %v154_v29  ;;  %v201_v7 = vsel %vm193_vm9, %v154_v29, 0.0 }
 0x1d0   :  { %v167_v37 = vmax.f32 %v161_v34, %v162_v32 }
 0x1d5   :  { %v160_v30 = vpop.xlane.xlu0 %159 }
 0x1d6   :  { %v165_v31 = vsel %vm164_vm2, %v160_v30, -inf  ;;  %v203_v5 = vsel %vm195_vm7, %v160_v30, 0.0 }
 0x1d7   :  { %v166_v35 = vmax.f32 %v148_v27, %v165_v31 }
 0x1d9   :  { %v157_v33 = vpop.xlane.xlu1 %156 }
 0x1da   :  { %v163_v36 = vmax.f32 %v145_v26, %v157_v33  ;;  %v202_v8 = vsel %vm194_vm10, %v157_v33, 0.0 }
 0x1dc   :  { %v168_v38 = vmax.f32 %v163_v36, %v166_v35 }
 0x1de   :  { %v169_v39 = vmax.f32 %v167_v37, %v168_v38 }
 0x1e0   :  { %v170_v40 = vrot.slane %v169_v39, 4 }
 0x1e2   :  { %v171_v41 = vmax.f32 %v169_v39, %v170_v40 }
 0x1e4   :  { %v172_v42 = vrot.slane %v171_v41, 2 }
 0x1e6   :  { %v173_v43 = vmax.f32 %v171_v41, %v172_v42 }
 0x1e8   :  { %v174_v44 = vrot.slane %v173_v43, 1 }
 0x1ea   :  { %v175_v45 = vmax.f32 %v173_v43, %v174_v44 }
 0x1ec   :  { %279 = vpush %v175_v45 }
 0x1ff   :  { %v220_v46 = vpop.trf.xlu1 }
 0x200   :  { %v236_v9 = vsub.f32 %v196_v0, %v220_v46 }
 0x203   :  { %v221_v47 = vpop.trf.xlu1 }
 0x204   :  { %v237_v10 = vsub.f32 %v197_v1, %v221_v47 }
 0x207   :  { %v222_v48 = vpop.trf.xlu1 }
 0x208   :  { %v238_v11 = vsub.f32 %v198_v2, %v222_v48 }
 0x20b   :  { %v223_v49 = vpop.trf.xlu1 }
 0x20c   :  { %v239_v12 = vsub.f32 %v199_v3, %v223_v49 }
 0x20f   :  { %v224_v50 = vpop.trf.xlu1 }
 0x210   :  { %v240_v14 = vsub.f32 %v200_v6, %v224_v50 }
 0x213   :  { %v225_v52 = vpop.trf.xlu1 }
 0x214   :  { %v241_v15 = vsub.f32 %v201_v7, %v225_v52 }
 0x217   :  { %v226_v63 = vpop.trf.xlu1 }
 0x218   :  { %v242_v16 = vsub.f32 %v202_v8, %v226_v63 }
 0x21b   :  { %v227_v4 = vpop.trf.xlu1 }
 0x21c   :  { %v243_v17 = vsub.f32 %v203_v5, %v227_v4 }
 0x21d   :  { %s280_s0 = spop %279 }
 0x21e   :  { %v244_v53 = vstv %s280_s0 }
 0x21f   :  { %302 = vrcp.f32 %v244_v53 }
 0x22c   :  { %v303_v13 = vpop.eup %302 }
 0x22d   :  { %v246_v18 = vmul.f32 %v303_v13, %v236_v9  ;;  %v247_v19 = vmul.f32 %v303_v13, %v237_v10  ;;  %v248_v20 = vmul.f32 %v303_v13, %v238_v11  ;;  %v249_v21 = vmul.f32 %v303_v13, %v239_v12 }
 0x22e   :  { %v250_v22 = vmul.f32 %v303_v13, %v240_v14  ;;  %v251_v23 = vmul.f32 %v303_v13, %v241_v15  ;;  %v252_v24 = vmul.f32 %v303_v13, %v242_v16  ;;  %v253_v25 = vmul.f32 %v303_v13, %v243_v17 }
 0x22f   :  { %254 = vst.msk [vmem:[#allocation5] sm:$0xff] %vm87_vm0, %v246_v18  ;;  %255 = vst.msk [vmem:[#allocation5 + $0x8] sm:$0xff] %vm87_vm0, %v247_v19 }
 0x230   :  { %256 = vst.msk [vmem:[#allocation5 + $0x10] sm:$0xff] %vm87_vm0, %v248_v20  ;;  %257 = vst.msk [vmem:[#allocation5 + $0x18] sm:$0xff] %vm87_vm0, %v249_v21 }
 0x231   :  { %258 = vst.msk [vmem:[#allocation5 + $0x20] sm:$0xff] %vm87_vm0, %v250_v22  ;;  %259 = vst.msk [vmem:[#allocation5 + $0x28] sm:$0xff] %vm87_vm0, %v251_v23 }
 0x232   :  { %260 = vst.msk [vmem:[#allocation5 + $0x30] sm:$0xff] %vm87_vm0, %v252_v24 }
 0x233   :  { %261 = vst.msk [vmem:[#allocation5 + $0x38] sm:$0x3f] %vm109_vm1, %v253_v25 }
 0x234   :  { %335 = shalt.err (!%p332_p9)
}
 0x235   :  { %273 = dma.vmem_to_hbm [thread:$0]  %s268_s14, 1024, %s420_s1, [#allocation4], %s349_s9, %s349_s9, %s350_s10  }
 0x236   :  { %346 = dma.done.wait [#allocation4], 1024  }
 0x237   :  { %347 = vsyncadd [#allocation4], 4294966272 }
 0x238   :  { %277 = vsyncpa [#allocation3], 1 }
 0x239   :  { %278 = vsyncpa [#allocation4], 1 }

</bundles_post_ra>
